<compile_context>
chip_gen: v5e
topology: v5e:2x2
jax: 0.10.0
libtpu: 0.0.40
codegen_flags: <defaults>
</compile_context>

<pallas_src>
import functools

import jax
import jax.numpy as jnp
from jax.experimental import pallas as pl
from jax.experimental.pallas import tpu as pltpu  # noqa: F401  (TPU backend)


def _round_up(n, m):
    return ((n + m - 1) // m) * m


def _cnp_kernel(obs_ref, mask_norm_ref, tgt_ref, bmat_ref,
                ew0_ref, eb0_ref, ew1_ref, eb1_ref, ew2_ref, eb2_ref,
                qw0r_ref, qw0x_ref, qb0_ref, qw1_ref, qb1_ref,
                qw2_ref, qb2_ref,
                out_ref, *, compute_dtype):
    """Fused encoder -> normalized-mask pooling -> decoder.

    All refs are full arrays resident in VMEM.  Matmul operands are
    compute_dtype (bf16 by default) with f32 accumulation; bias / ReLU /
    pooling results / softplus inputs stay f32.
    """
    f32 = jnp.float32
    cd = compute_dtype

    def dot(a, w_ref):
        # Weights / helper matrices are already stored in compute_dtype; cast
        # the (f32) activation to match so the MXU runs at the narrow-dtype
        # rate, accumulate in f32.  astype is a no-op when a is already cd.
        return jnp.dot(a.astype(cd), w_ref[...], preferred_element_type=f32)

    # ---- encoder hidden layers over all context rows: (B*C, din_pad) -> (B*C, H)
    h = jnp.maximum(dot(obs_ref[...], ew0_ref) + eb0_ref[...], 0.0)
    h = jnp.maximum(dot(h, ew1_ref) + eb1_ref[...], 0.0)

    # ---- masked mean on the MXU (mask rows pre-normalized to sum to 1) -------
    #   pooled[b, :] = sum_c (mask[b, c] / den[b]) * h[b*C + c, :]
    pooled = jnp.dot(mask_norm_ref[...], h.astype(cd),
                     preferred_element_type=f32)                # (B, H)

    # ---- last encoder layer, commuted past the pooling (exact: rows sum to 1)
    r = dot(pooled, ew2_ref) + eb2_ref[...]                     # (B, H)

    # ---- decoder, first layer split (no broadcast / concat) -----------------
    # q0 = relu([r | x] @ qw0 + qb0) == relu(r @ qw0[:H] + x @ qw0[H:] + qb0)
    r_proj = dot(r, qw0r_ref)                                   # (B, H)   once/batch
    r_rows = jnp.dot(bmat_ref[...], r_proj.astype(cd),
                     preferred_element_type=f32)                # (B*T, H) MXU scatter
    x_proj = dot(tgt_ref[...], qw0x_ref)                        # (B*T, H)
    q = jnp.maximum(r_rows + x_proj + qb0_ref[...], 0.0)
    q = jnp.maximum(dot(q, qw1_ref) + qb1_ref[...], 0.0)

    # Lane-dense (B*T, out_pad) f32 slab; real outputs live in lanes [0, 2*d_y).
    out_ref[...] = dot(q, qw2_ref) + qb2_ref[...]


def cnp_forward_pallas(observation, target, observation_mask, params, *,
                       d_x, d_y, hidden, min_std=0.1,
                       compute_dtype=jnp.bfloat16):
    """CNP forward.  observation: (B, C, d_x+d_y), target: (B, T, d_x),
    observation_mask: (B, C) or None.  Returns (mean, std), each (B, T, d_y).

    compute_dtype (default bf16) controls the MXU operand dtype on every TPU
    generation; accumulation and all element-wise math stay f32.  Note that in
    the bf16 path the encoder hidden activations and the normalized mask are
    quantized to bf16 before the pooling matmul as well, so pooling inputs see
    bf16 rounding.  Use compute_dtype=jnp.float32 for exact reference matching.
    """
    f32 = jnp.float32
    cd = compute_dtype
    B, C, d_in = observation.shape
    T = target.shape[1]
    H = hidden
    assert d_in == d_x + d_y

    din_pad = _round_up(d_in, 8)
    dx_pad = _round_up(d_x, 8)
    out_pad = _round_up(2 * d_y, 128)          # lane-dense output slab width

    if observation_mask is None:
        observation_mask = jnp.ones((B, C), f32)
    observation_mask = observation_mask.astype(f32)
    # NOTE: an all-zero mask row gives a 0/0 normalizer (same undefined
    # behavior as the PyTorch reference); callers must provide >=1 context pt.

    # ---- layout plumbing in the wrapper (flatten batch, pad lanes, cast) -----
    obs_flat = jnp.pad(observation.astype(f32),
                       ((0, 0), (0, 0), (0, din_pad - d_in))
                       ).reshape(B * C, din_pad).astype(cd)
    tgt_flat = jnp.pad(target.astype(f32),
                       ((0, 0), (0, 0), (0, dx_pad - d_x))
                       ).reshape(B * T, dx_pad).astype(cd)

    # (B, B*C) block-diagonal mask with 1/den folded in: rows sum to 1, so the
    # pooling is an exact weighted mean and ew2/eb2 commute with it.
    den = jnp.sum(observation_mask, axis=1, keepdims=True)      # (B, 1)
    mask_norm = (jnp.eye(B, dtype=f32)[:, :, None]
                 * (observation_mask / den)[None, :, :]).reshape(B, B * C).astype(cd)
    # (B*T, B) 0/1 scatter matrix: rows [b*T, (b+1)*T) select batch b.
    bmat = jnp.repeat(jnp.eye(B, dtype=f32), T, axis=0).astype(cd)

    # ---- weight plumbing: pad / split once, matrices in compute_dtype --------
    wt = lambda w: w.astype(cd)
    ew0 = wt(jnp.pad(params["ew0"], ((0, din_pad - d_in), (0, 0))))
    ew1 = wt(params["ew1"])
    ew2 = wt(params["ew2"])
    qw0_r = wt(params["qw0"][:H])                                    # acts on r
    qw0_x = wt(jnp.pad(params["qw0"][H:], ((0, dx_pad - d_x), (0, 0))))  # acts on target
    qw1 = wt(params["qw1"])
    qw2 = wt(jnp.pad(params["qw2"], ((0, 0), (0, out_pad - 2 * d_y))))
    eb0 = params["eb0"].astype(f32)
    eb1 = params["eb1"].astype(f32)
    eb2 = params["eb2"].astype(f32)
    qb0 = params["qb0"].astype(f32)
    qb1 = params["qb1"].astype(f32)
    qb2 = jnp.pad(params["qb2"].astype(f32), ((0, 0), (0, out_pad - 2 * d_y)))

    kernel = functools.partial(_cnp_kernel, compute_dtype=cd)
    # Single invocation, no grid: every operand is a full-array VMEM block, so
    # weights are copied in exactly once and there is no per-step pipeline cost.
    # (Production sizes: tile B / target rows with a "parallel" grid instead.)
    out_slab = pl.pallas_call(
        kernel,
        out_shape=jax.ShapeDtypeStruct((B * T, out_pad), f32),
    )(obs_flat, mask_norm, tgt_flat, bmat,
      ew0, eb0, ew1, eb1, ew2, eb2,
      qw0_r, qw0_x, qb0, qw1, qb1, qw2, qb2)

    # Epilogue (split + softplus) is trivial layout plumbing in XLA.
    out = out_slab[:, :2 * d_y].reshape(B, T, 2 * d_y)
    mean = out[..., :d_y]
    std = jax.nn.softplus(out[..., d_y:]) + min_std
    return mean, std


# ---------------------------------------------------------------------------
# Parameter construction (deterministic, synthetic) + plain-JAX reference.
# ---------------------------------------------------------------------------
def init_params(key, d_x, d_y, hidden):
    d_in = d_x + d_y
    d_qin = hidden + d_x
    keys = jax.random.split(key, 12)

    def lin(kw, kb, fan_in, fan_out):
        s = 1.0 / jnp.sqrt(jnp.float32(fan_in))
        w = jax.random.uniform(kw, (fan_in, fan_out), jnp.float32, -s, s)
        b = jax.random.uniform(kb, (1, fan_out), jnp.float32, -s, s)
        return w, b

    p = {}
    p["ew0"], p["eb0"] = lin(keys[0], keys[1], d_in, hidden)
    p["ew1"], p["eb1"] = lin(keys[2], keys[3], hidden, hidden)
    p["ew2"], p["eb2"] = lin(keys[4], keys[5], hidden, hidden)
    p["qw0"], p["qb0"] = lin(keys[6], keys[7], d_qin, hidden)
    p["qw1"], p["qb1"] = lin(keys[8], keys[9], hidden, hidden)
    p["qw2"], p["qb2"] = lin(keys[10], keys[11], hidden, 2 * d_y)
    return p


def cnp_forward_ref(obs, tgt, mask2d, params, *, d_y, min_std=0.1):
    """Pure-JAX reference matching the PyTorch forward exactly."""
    relu = lambda x: jnp.maximum(x, 0.0)
    h = relu(obs @ params["ew0"] + params["eb0"])
    h = relu(h @ params["ew1"] + params["eb1"])
    h = h @ params["ew2"] + params["eb2"]                      # (B, C, H)
    num = jnp.sum(h * mask2d[:, :, None], axis=1)              # (B, H)
    den = jnp.sum(mask2d, axis=1, keepdims=True)               # (B, 1)
    r = num / den
    T = tgt.shape[1]
    r_b = jnp.repeat(r[:, None, :], T, axis=1)
    h_cat = jnp.concatenate([r_b, tgt], axis=-1)
    q = relu(h_cat @ params["qw0"] + params["qb0"])
    q = relu(q @ params["qw1"] + params["qb1"])
    out = q @ params["qw2"] + params["qb2"]
    mean = out[..., :d_y]
    std = jax.nn.softplus(out[..., d_y:]) + min_std
    return mean, std


if __name__ == "__main__":
    # Small shapes consistent with the CNP forward signature.
    B, C, T = 2, 8, 8          # batch, n_context, n_target
    d_x, d_y, hidden = 2, 1, 32
    min_std = 0.1

    key = jax.random.PRNGKey(0)
    k_obs, k_tgt, k_par = jax.random.split(key, 3)

    observation = jax.random.normal(k_obs, (B, C, d_x + d_y), jnp.float32)
    target = jax.random.normal(k_tgt, (B, T, d_x), jnp.float32)
    # Binary observation mask (first batch uses 6 context points, second uses 8).
    observation_mask = jnp.stack([
        jnp.array([1, 1, 1, 1, 1, 1, 0, 0], jnp.float32),
        jnp.ones((C,), jnp.float32),
    ])

    params = init_params(k_par, d_x, d_y, hidden)

    mean_ref, std_ref = cnp_forward_ref(observation, target, observation_mask,
                                        params, d_y=d_y, min_std=min_std)

    # f32 matmul path: exact-precision check (mean now uses exact normalized
    # mask pooling — no approx reciprocal).
    mean_f32, std_f32 = cnp_forward_pallas(observation, target, observation_mask,
                                           params, d_x=d_x, d_y=d_y, hidden=hidden,
                                           min_std=min_std,
                                           compute_dtype=jnp.float32)
    mean_f32 = jax.block_until_ready(mean_f32)
    std_f32 = jax.block_until_ready(std_f32)
    assert mean_f32.shape == (B, T, d_y) and std_f32.shape == (B, T, d_y)
    assert jnp.allclose(mean_f32, mean_ref, atol=1e-4, rtol=1e-3)
    assert jnp.allclose(std_f32, std_ref, atol=1e-4, rtol=1e-3)
    assert bool(jnp.all(std_f32 > 0.0))

    # Default path: bf16 MXU operands, f32 accumulation / element-wise math
    # (the recommended configuration on v5e / v6e / v7x).
    mean, std = cnp_forward_pallas(observation, target, observation_mask, params,
                                   d_x=d_x, d_y=d_y, hidden=hidden,
                                   min_std=min_std)
    mean = jax.block_until_ready(mean)
    std = jax.block_until_ready(std)
    assert mean.shape == (B, T, d_y) and std.shape == (B, T, d_y)
    assert jnp.allclose(mean, mean_ref, atol=5e-2, rtol=5e-2)
    assert jnp.allclose(std, std_ref, atol=5e-2, rtol=5e-2)
    assert bool(jnp.all(std > 0.0))

    print("KERNEL_OK")
</pallas_src>

<mosaic_0001>
module attributes {stable_mosaic.version = 11 : i64} {
  func.func @_cnp_kernel(%arg0: memref<16x8xf32, #tpu.memory_space<vmem>>, %arg1: memref<2x16xf32, #tpu.memory_space<vmem>>, %arg2: memref<16x8xf32, #tpu.memory_space<vmem>>, %arg3: memref<16x2xf32, #tpu.memory_space<vmem>>, %arg4: memref<8x32xf32, #tpu.memory_space<vmem>>, %arg5: memref<1x32xf32, #tpu.memory_space<vmem>>, %arg6: memref<32x32xf32, #tpu.memory_space<vmem>>, %arg7: memref<1x32xf32, #tpu.memory_space<vmem>>, %arg8: memref<32x32xf32, #tpu.memory_space<vmem>>, %arg9: memref<1x32xf32, #tpu.memory_space<vmem>>, %arg10: memref<32x32xf32, #tpu.memory_space<vmem>>, %arg11: memref<8x32xf32, #tpu.memory_space<vmem>>, %arg12: memref<1x32xf32, #tpu.memory_space<vmem>>, %arg13: memref<32x32xf32, #tpu.memory_space<vmem>>, %arg14: memref<1x32xf32, #tpu.memory_space<vmem>>, %arg15: memref<32x128xf32, #tpu.memory_space<vmem>>, %arg16: memref<1x128xf32, #tpu.memory_space<vmem>>, %arg17: memref<16x128xf32, #tpu.memory_space<vmem>>) attributes {dimension_semantics = [], scalar_prefetch = 0 : i64, scratch_operands = 0 : i64, tpu.core_type = #tpu.core_type<tc>} {
    %c0 = arith.constant 0 : index
    %c0_0 = arith.constant 0 : index
    %0 = vector.load %arg0[%c0, %c0_0] : memref<16x8xf32, #tpu.memory_space<vmem>>, vector<16x8xf32>
    %c0_1 = arith.constant 0 : index
    %c0_2 = arith.constant 0 : index
    %1 = vector.load %arg4[%c0_1, %c0_2] : memref<8x32xf32, #tpu.memory_space<vmem>>, vector<8x32xf32>
    %cst = arith.constant dense<0.000000e+00> : vector<16x32xf32>
    %2 = tpu.matmul %0, %1, %cst {dimension_numbers = #tpu.dot_dimension_numbers<[1], [0], [0], [1], [0, 0, 1, 1], [], []>} : vector<16x8xf32>, vector<8x32xf32>, vector<16x32xf32> -> vector<16x32xf32>
    %c0_3 = arith.constant 0 : index
    %c0_4 = arith.constant 0 : index
    %3 = vector.load %arg5[%c0_3, %c0_4] : memref<1x32xf32, #tpu.memory_space<vmem>>, vector<1x32xf32>
    %4 = vector.broadcast %3 : vector<1x32xf32> to vector<16x32xf32>
    %5 = arith.addf %2, %4 : vector<16x32xf32>
    %cst_5 = arith.constant 0.000000e+00 : f32
    %6 = vector.broadcast %cst_5 : f32 to vector<16x32xf32>
    %7 = arith.maximumf %5, %6 : vector<16x32xf32>
    %c0_6 = arith.constant 0 : index
    %c0_7 = arith.constant 0 : index
    %8 = vector.load %arg6[%c0_6, %c0_7] : memref<32x32xf32, #tpu.memory_space<vmem>>, vector<32x32xf32>
    %cst_8 = arith.constant dense<0.000000e+00> : vector<16x32xf32>
    %9 = tpu.matmul %7, %8, %cst_8 {dimension_numbers = #tpu.dot_dimension_numbers<[1], [0], [0], [1], [0, 0, 1, 1], [], []>} : vector<16x32xf32>, vector<32x32xf32>, vector<16x32xf32> -> vector<16x32xf32>
    %c0_9 = arith.constant 0 : index
    %c0_10 = arith.constant 0 : index
    %10 = vector.load %arg7[%c0_9, %c0_10] : memref<1x32xf32, #tpu.memory_space<vmem>>, vector<1x32xf32>
    %11 = vector.broadcast %10 : vector<1x32xf32> to vector<16x32xf32>
    %12 = arith.addf %9, %11 : vector<16x32xf32>
    %cst_11 = arith.constant 0.000000e+00 : f32
    %13 = vector.broadcast %cst_11 : f32 to vector<16x32xf32>
    %14 = arith.maximumf %12, %13 : vector<16x32xf32>
    %c0_12 = arith.constant 0 : index
    %c0_13 = arith.constant 0 : index
    %15 = vector.load %arg1[%c0_12, %c0_13] : memref<2x16xf32, #tpu.memory_space<vmem>>, vector<2x16xf32>
    %cst_14 = arith.constant dense<0.000000e+00> : vector<2x32xf32>
    %16 = tpu.matmul %15, %14, %cst_14 {dimension_numbers = #tpu.dot_dimension_numbers<[1], [0], [0], [1], [0, 0, 1, 1], [], []>} : vector<2x16xf32>, vector<16x32xf32>, vector<2x32xf32> -> vector<2x32xf32>
    %c0_15 = arith.constant 0 : index
    %c0_16 = arith.constant 0 : index
    %17 = vector.load %arg8[%c0_15, %c0_16] : memref<32x32xf32, #tpu.memory_space<vmem>>, vector<32x32xf32>
    %cst_17 = arith.constant dense<0.000000e+00> : vector<2x32xf32>
    %18 = tpu.matmul %16, %17, %cst_17 {dimension_numbers = #tpu.dot_dimension_numbers<[1], [0], [0], [1], [0, 0, 1, 1], [], []>} : vector<2x32xf32>, vector<32x32xf32>, vector<2x32xf32> -> vector<2x32xf32>
    %c0_18 = arith.constant 0 : index
    %c0_19 = arith.constant 0 : index
    %19 = vector.load %arg9[%c0_18, %c0_19] : memref<1x32xf32, #tpu.memory_space<vmem>>, vector<1x32xf32>
    %20 = vector.broadcast %19 : vector<1x32xf32> to vector<2x32xf32>
    %21 = arith.addf %18, %20 : vector<2x32xf32>
    %c0_20 = arith.constant 0 : index
    %c0_21 = arith.constant 0 : index
    %22 = vector.load %arg10[%c0_20, %c0_21] : memref<32x32xf32, #tpu.memory_space<vmem>>, vector<32x32xf32>
    %cst_22 = arith.constant dense<0.000000e+00> : vector<2x32xf32>
    %23 = tpu.matmul %21, %22, %cst_22 {dimension_numbers = #tpu.dot_dimension_numbers<[1], [0], [0], [1], [0, 0, 1, 1], [], []>} : vector<2x32xf32>, vector<32x32xf32>, vector<2x32xf32> -> vector<2x32xf32>
    %c0_23 = arith.constant 0 : index
    %c0_24 = arith.constant 0 : index
    %24 = vector.load %arg3[%c0_23, %c0_24] : memref<16x2xf32, #tpu.memory_space<vmem>>, vector<16x2xf32>
    %cst_25 = arith.constant dense<0.000000e+00> : vector<16x32xf32>
    %25 = tpu.matmul %24, %23, %cst_25 {dimension_numbers = #tpu.dot_dimension_numbers<[1], [0], [0], [1], [0, 0, 1, 1], [], []>} : vector<16x2xf32>, vector<2x32xf32>, vector<16x32xf32> -> vector<16x32xf32>
    %c0_26 = arith.constant 0 : index
    %c0_27 = arith.constant 0 : index
    %26 = vector.load %arg2[%c0_26, %c0_27] : memref<16x8xf32, #tpu.memory_space<vmem>>, vector<16x8xf32>
    %c0_28 = arith.constant 0 : index
    %c0_29 = arith.constant 0 : index
    %27 = vector.load %arg11[%c0_28, %c0_29] : memref<8x32xf32, #tpu.memory_space<vmem>>, vector<8x32xf32>
    %cst_30 = arith.constant dense<0.000000e+00> : vector<16x32xf32>
    %28 = tpu.matmul %26, %27, %cst_30 {dimension_numbers = #tpu.dot_dimension_numbers<[1], [0], [0], [1], [0, 0, 1, 1], [], []>} : vector<16x8xf32>, vector<8x32xf32>, vector<16x32xf32> -> vector<16x32xf32>
    %29 = arith.addf %25, %28 : vector<16x32xf32>
    %c0_31 = arith.constant 0 : index
    %c0_32 = arith.constant 0 : index
    %30 = vector.load %arg12[%c0_31, %c0_32] : memref<1x32xf32, #tpu.memory_space<vmem>>, vector<1x32xf32>
    %31 = vector.broadcast %30 : vector<1x32xf32> to vector<16x32xf32>
    %32 = arith.addf %29, %31 : vector<16x32xf32>
    %cst_33 = arith.constant 0.000000e+00 : f32
    %33 = vector.broadcast %cst_33 : f32 to vector<16x32xf32>
    %34 = arith.maximumf %32, %33 : vector<16x32xf32>
    %c0_34 = arith.constant 0 : index
    %c0_35 = arith.constant 0 : index
    %35 = vector.load %arg13[%c0_34, %c0_35] : memref<32x32xf32, #tpu.memory_space<vmem>>, vector<32x32xf32>
    %cst_36 = arith.constant dense<0.000000e+00> : vector<16x32xf32>
    %36 = tpu.matmul %34, %35, %cst_36 {dimension_numbers = #tpu.dot_dimension_numbers<[1], [0], [0], [1], [0, 0, 1, 1], [], []>} : vector<16x32xf32>, vector<32x32xf32>, vector<16x32xf32> -> vector<16x32xf32>
    %c0_37 = arith.constant 0 : index
    %c0_38 = arith.constant 0 : index
    %37 = vector.load %arg14[%c0_37, %c0_38] : memref<1x32xf32, #tpu.memory_space<vmem>>, vector<1x32xf32>
    %38 = vector.broadcast %37 : vector<1x32xf32> to vector<16x32xf32>
    %39 = arith.addf %36, %38 : vector<16x32xf32>
    %cst_39 = arith.constant 0.000000e+00 : f32
    %40 = vector.broadcast %cst_39 : f32 to vector<16x32xf32>
    %41 = arith.maximumf %39, %40 : vector<16x32xf32>
    %c0_40 = arith.constant 0 : index
    %c0_41 = arith.constant 0 : index
    %42 = vector.load %arg15[%c0_40, %c0_41] : memref<32x128xf32, #tpu.memory_space<vmem>>, vector<32x128xf32>
    %cst_42 = arith.constant dense<0.000000e+00> : vector<16x128xf32>
    %43 = tpu.matmul %41, %42, %cst_42 {dimension_numbers = #tpu.dot_dimension_numbers<[1], [0], [0], [1], [0, 0, 1, 1], [], []>} : vector<16x32xf32>, vector<32x128xf32>, vector<16x128xf32> -> vector<16x128xf32>
    %c0_43 = arith.constant 0 : index
    %c0_44 = arith.constant 0 : index
    %44 = vector.load %arg16[%c0_43, %c0_44] : memref<1x128xf32, #tpu.memory_space<vmem>>, vector<1x128xf32>
    %45 = vector.broadcast %44 : vector<1x128xf32> to vector<16x128xf32>
    %46 = arith.addf %43, %45 : vector<16x128xf32>
    %c0_45 = arith.constant 0 : index
    %c0_46 = arith.constant 0 : index
    %47 = vector.load %arg17[%c0_45, %c0_46] : memref<16x128xf32, #tpu.memory_space<vmem>>, vector<16x128xf32>
    tpu.vector_store %arg17[%c0_45, %c0_46], %46 {strides = array<i32>} : memref<16x128xf32, #tpu.memory_space<vmem>>, vector<16x128xf32>,
    return
  }
}

</mosaic_0001>

<bundles_post_ra>
// kernel: tpu_custom_call.1
= control target key start
LH: loop header
LB: loop body
LE: loop exit
PB: predicated region body
PF: predicated region fallthrough
CT: control target
= control target key end

     0   :  { %s810_s0 = inlined_call_operand.vmem [shape: f32[16,8], index: 0, kind: input, shape index: {}]   ;;  %s811_s1 = inlined_call_operand.vmem [shape: f32[2,16], index: 1, kind: input, shape index: {}]   ;;  %s812_s2 = inlined_call_operand.vmem [shape: f32[16,8], index: 2, kind: input, shape index: {}]   ;;  %s813_s3 = inlined_call_operand.vmem [shape: f32[16,2], index: 3, kind: input, shape index: {}]   ;;  %s814_s4 = inlined_call_operand.vmem [shape: f32[8,32], index: 4, kind: input, shape index: {}]   ;;  %s815_s5 = inlined_call_operand.vmem [shape: f32[1,32], index: 5, kind: input, shape index: {}]   ;;  %s816_s6 = inlined_call_operand.vmem [shape: f32[32,32], index: 6, kind: input, shape index: {}]   ;;  %s817_s7 = inlined_call_operand.vmem [shape: f32[1,32], index: 7, kind: input, shape index: {}]   ;;  %s818_s8 = inlined_call_operand.hbm [shape: f32[32,32], index: 8, kind: input, shape index: {}]   ;;  %s819_s9 = inlined_call_operand.vmem [shape: f32[1,32], index: 9, kind: input, shape index: {}]   ;;  %s820_s10 = inlined_call_operand.hbm [shape: f32[32,32], index: 10, kind: input, shape index: {}]   ;;  %s821_s11 = inlined_call_operand.vmem [shape: f32[8,32], index: 11, kind: input, shape index: {}]   ;;  %s822_s12 = inlined_call_operand.vmem [shape: f32[1,32], index: 12, kind: input, shape index: {}]   ;;  %s823_s13 = inlined_call_operand.hbm [shape: f32[32,32], index: 13, kind: input, shape index: {}]   ;;  %s824_s14 = inlined_call_operand.vmem [shape: f32[1,32], index: 14, kind: input, shape index: {}]   ;;  %s825_s15 = inlined_call_operand.hbm [shape: f32[32,128], index: 15, kind: input, shape index: {}]   ;;  %s826_s16 = inlined_call_operand.vmem [shape: f32[1,128], index: 16, kind: input, shape index: {}]   ;;  %s827_s17 = inlined_call_operand.hbm [shape: f32[16,128], index: 17, kind: output, shape index: {}]  }
   0x1   :  { %829 = sst [smem:[#allocation15_spill]] %s810_s0 }
   0x2   :  { %830 = sst [smem:[#allocation16_spill]] %s811_s1 }
   0x3   :  { %22 = vsyncpa [#allocation3], 0 }
   0x4   :  { %23 = vsyncpa [#allocation6], 0 }
   0x5   :  { %24 = vsyncpa [#allocation9], 0 }
   0x6   :  { %25 = vsyncpa [#allocation4], 0  ;;  %s61_s26 = sshll.u32 %s820_s10, 4  ;;  %s614_s27 = smov [#allocation5]   ;;  %s62_s26 = int_to_ptr.hbm [resolvable:$true] %s61_s26 }
   0x7   :  { %s63_s28 = sshll.u32 %s614_s27, 4  ;;  %s46_s30 = sshll.u32 %s818_s8, 4  ;;  %s64_s28 = int_to_ptr.vmem [resolvable:$true] %s63_s28  ;;  %s47_s30 = int_to_ptr.hbm [resolvable:$true] %s46_s30 }
   0x8   :  { %s615_s18 = smov 128   ;;  %s616_s19 = smov 8  }
   0x9   :  { %69 = dma.hbm_to_vmem [thread:$0]  %s62_s26, 512, %s64_s28, [#allocation6], %s615_s18, %s615_s18, %s616_s19  }
   0xa   :  { %s617_s1 = smov [#allocation2]   ;;  %s78_s10 = sshll.u32 %s823_s13, 4  ;;  %s79_s10 = int_to_ptr.hbm [resolvable:$true] %s78_s10 }
   0xb   :  { %s48_s20 = sshll.u32 %s617_s1, 4  ;;  %s93_s24 = sshll.u32 %s825_s15, 4  ;;  %s49_s20 = int_to_ptr.vmem [resolvable:$true] %s48_s20  ;;  %s94_s24 = int_to_ptr.hbm [resolvable:$true] %s93_s24 }
   0xc   :  { %54 = dma.hbm_to_vmem [thread:$0]  %s47_s30, 512, %s49_s20, [#allocation3], %s615_s18, %s615_s18, %s616_s19  }
   0xd   :  { %s618_s25 = smov [#allocation7]   ;;  %s619_s26 = smov [#allocation8]  }
   0xe   :  { %s80_s27 = sshll.u32 %s618_s25, 4  ;;  %s95_s13 = sshll.u32 %s619_s26, 4  ;;  %s81_s27 = int_to_ptr.vmem [resolvable:$true] %s80_s27  ;;  %s96_s13 = int_to_ptr.vmem [resolvable:$true] %s95_s13 }
   0xf   :  { %86 = dma.hbm_to_vmem [thread:$0]  %s79_s10, 512, %s81_s27, [#allocation6], %s615_s18, %s615_s18, %s616_s19  }
  0x10   :  { %101 = dma.hbm_to_vmem [thread:$0]  %s94_s24, 512, %s96_s13, [#allocation9], %s615_s18, %s615_s18, %s616_s19  }
  0x11   :  { %606 = dma.done.wait [#allocation3], 512  }
  0x12   :  { %607 = vsyncadd [#allocation3], 4294966784 }
  0x13   :  { %608 = dma.done.wait [#allocation6], 1024  }
  0x14   :  { %609 = vsyncadd [#allocation6], 4294966272 }
  0x15   :  { %610 = dma.done.wait [#allocation9], 512  }
  0x16   :  { %611 = vsyncadd [#allocation9], 4294966784  ;;  %vm127_vm0 = vcmask 64512   ;;  %v122_v0 = vld [vmem:[%s814_s4] sm:$0xff]  ;;  %s831_s30 = sld [smem:[#allocation15_spill]]  ;;  %v162_v2 = vld [vmem:[%s816_s6 + $0x18] sm:$0xff] }
  0x17   :  { %149 = vmatpush.msra.mxu0 %v122_v0  ;;  %186 = vmatpush.msra.mxu1 %v162_v2  ;;  %v161_v4 = vld [vmem:[%s816_s6 + $0x10] sm:$0xff]  ;;  %v160_v5 = vld [vmem:[%s816_s6 + $0x8] sm:$0xff]  ;;  %v159_v6 = vld [vmem:[%s816_s6] sm:$0xff]  ;;  %vm167_vm1 = vcmask 261120   ;;  %s832_s28 = sld [smem:[#allocation16_spill]]  ;;  %vm200_vm2 = vcmask 130048  }
  0x18   :  { %v480_v7 = vld [vmem:[%s815_s5] ss:$0 sm:$0xff]  ;;  %v227_v14 = vld [vmem:[#allocation2 + $0x18] sm:$0xff]  ;;  %v226_v15 = vld [vmem:[#allocation2 + $0x10] sm:$0xff]  ;;  %vm323_vm3 = vcmask 1041408   ;;  %vm316_vm4 = vcmask 15360  }
  0x19   :  { %187 = vmatpush.msra.mxu1 %v161_v4  ;;  %247 = vmatpush.msra.mxu3 %v227_v14  ;;  %v225_v16 = vld [vmem:[#allocation2 + $0x8] sm:$0xff]  ;;  %v481_v18 = vld [vmem:[%s817_s7] ss:$0 sm:$0xff]  ;;  %v258_v26 = vld [vmem:[#allocation5 + $0x18] sm:$0xff]  ;;  %s620_s25 = smov [#allocation10]   ;;  %s442_s6 = sshll.u32 %s827_s17, 4  ;;  %s443_s6 = int_to_ptr.hbm [resolvable:$true] %s442_s6 }
  0x1a   :  { %v224_v25 = vld [vmem:[#allocation2] sm:$0xff]  ;;  %v257_v27 = vld [vmem:[#allocation5 + $0x10] sm:$0xff]  ;;  %v256_v29 = vld [vmem:[#allocation5 + $0x8] sm:$0xff]  ;;  %s440_s27 = sshll.u32 %s620_s25, 4  ;;  %s441_s27 = int_to_ptr.vmem [resolvable:$true] %s440_s27 }
  0x1b   :  { %188 = vmatpush.msra.mxu1 %v160_v5  ;;  %248 = vmatpush.msra.mxu3 %v226_v15  ;;  %v255_v30 = vld [vmem:[#allocation5] sm:$0xff]  ;;  %v285_v36 = vld [vmem:[%s812_s2 + $0x8] sm:$0xff]  ;;  %v361_v37 = vld [vmem:[#allocation7 + $0x18] sm:$0xff] }
  0x1c   :  { %v120_v1 = vld [vmem:[%s831_s30] sm:$0xff]  ;;  %v121_v3 = vld [vmem:[%s831_s30 + $0x8] sm:$0xff]  ;;  %v360_v41 = vld [vmem:[#allocation7 + $0x10] sm:$0xff] }
  0x1d   :  { %457 = vmatmul.msk.f32.vlgmr.msra.gmra.mxu0 %vm127_vm0, %v120_v1  ;;  %189 = vmatpush.msra.mxu1 %v159_v6  ;;  %v199_v24 = vld [vmem:[%s832_s28] sm:$0x3]  ;;  %v283_v40 = vld [vmem:[%s813_s3 + $0x8] sm:$0xff]  ;;  %v400_v44 = vld [vmem:[#allocation8 + $0x18] sm:$0xff] }
  0x1e   :  { %249 = vmatpush.msra.mxu3 %v225_v16  ;;  %v482_v31 = vld [vmem:[%s819_s9] ss:$0 sm:$0xff]  ;;  %v359_v42 = vld [vmem:[#allocation7 + $0x8] sm:$0xff]  ;;  %v399_v45 = vld [vmem:[#allocation8 + $0x10] sm:$0xff] }
  0x1f   :  { %v286_v34 = vld [vmem:[%s821_s11] sm:$0xff]  ;;  %423 = vmatpush.msrb.mxu1 %v400_v44  ;;  %v398_v46 = vld [vmem:[#allocation8 + $0x8] sm:$0xff] }
  0x20   :  { %250 = vmatpush.msra.mxu3 %v224_v25  ;;  %v284_v35 = vld [vmem:[%s812_s2] sm:$0xff] }
  0x21   :  { %v282_v38 = vld [vmem:[%s813_s3] sm:$0xff]  ;;  %424 = vmatpush.msrb.mxu1 %v399_v45 }
  0x22   :  { %308 = vmatpush.msrb.mxu3 %v286_v34  ;;  %v358_v43 = vld [vmem:[#allocation7] sm:$0xff] }
  0x23   :  { %425 = vmatpush.msrb.mxu1 %v398_v46  ;;  %v483_v48 = vld [vmem:[%s822_s12] ss:$0 sm:$0xff] }
  0x24   :  { %v397_v58 = vld [vmem:[#allocation8] sm:$0xff] }
  0x25   :  { %458 = vmatmul.msk.f32.gmra.mxu0 %vm127_vm0, %v121_v3  ;;  %426 = vmatpush.msrb.mxu1 %v397_v58  ;;  %v484_v59 = vld [vmem:[%s824_s14] ss:$0 sm:$0xff] }
  0x26   :  { %v485_v2 = vld [vmem:[%s826_s16] ss:$0 sm:$0xff] }
  0x9a   :  { %v151_v8 = vpop.f32.mrf.mxu0 }
  0x9b   :  { %v152_v9 = vadd.f32 %v480_v7, %v151_v8 }
  0x9d   :  { %v157_v10 = vmax.f32 %v152_v9, 0.0 }
  0x9f   :  { %459 = vmatmul.msk.f32.vlgmr.msra.gmra.mxu1 %vm167_vm1, %v157_v10 }
  0xa2   :  { %v154_v11 = vpop.f32.mrf.mxu0 }
  0xa3   :  { %v155_v12 = vadd.f32 %v480_v7, %v154_v11 }
  0xa5   :  { %v158_v13 = vmax.f32 %v155_v12, 0.0 }
  0xa7   :  { %460 = vmatmul.msk.f32.gmra.mxu1 %vm167_vm1, %v158_v13 }
 0x11c   :  { %v191_v17 = vpop.f32.mrf.mxu1 }
 0x11d   :  { %v192_v20 = vadd.f32 %v481_v18, %v191_v17 }
 0x11f   :  { %v197_v23 = vmax.f32 %v192_v20, 0.0 }
 0x124   :  { %v194_v19 = vpop.f32.mrf.mxu1 }
 0x125   :  { %v195_v21 = vadd.f32 %v481_v18, %v194_v19 }
 0x127   :  { %v198_v22 = vmax.f32 %v195_v21, 0.0 }
 0x129   :  { %218 = vmatpush.msra.mxu2 %v198_v22 }
 0x12b   :  { %219 = vmatpush.msra.mxu2 %v197_v23 }
 0x12c   :  { %461 = vmatmul.msk.f32.vlgmr.msra.gmra.mxu2 %vm200_vm2, %v199_v24 }
 0x12d   :  { %274 = vmatpush.msrb.mxu2 %v258_v26 }
 0x12f   :  { %275 = vmatpush.msrb.mxu2 %v257_v27 }
 0x131   :  { %276 = vmatpush.msrb.mxu2 %v256_v29 }
 0x133   :  { %277 = vmatpush.msrb.mxu2 %v255_v30 }
 0x135   :  { %384 = vmatpush.msra.mxu2 %v361_v37 }
 0x137   :  { %385 = vmatpush.msra.mxu2 %v360_v41 }
 0x139   :  { %386 = vmatpush.msra.mxu2 %v359_v42 }
 0x13b   :  { %387 = vmatpush.msra.mxu2 %v358_v43 }
 0x1af   :  { %v221_v28 = vpop.f32.mrf.mxu2 }
 0x1b0   :  { %462 = vmatmul.msk.f32.vlgmr.msra.gmra.mxu3 %vm167_vm1, %v221_v28 }
 0x1b8   :  { %464 = vmatmul.msk.f32.vlgmr.msrb.gmra.mxu3 %vm127_vm0, %v284_v35 }
 0x1c0   :  { %465 = vmatmul.msk.f32.gmra.mxu3 %vm127_vm0, %v285_v36 }
 0x233   :  { %v252_v32 = vpop.f32.mrf.mxu3 }
 0x234   :  { %v253_v33 = vadd.f32 %v482_v31, %v252_v32 }
 0x236   :  { %463 = vmatmul.msk.f32.vlgmr.msrb.gmra.mxu2 %vm167_vm1, %v253_v33 }
 0x23b   :  { %v310_v47 = vpop.f32.mrf.mxu3 }
 0x243   :  { %v313_v53 = vpop.f32.mrf.mxu3 }
 0x2b9   :  { %v279_v39 = vpop.f32.mrf.mxu2 }
 0x2ba   :  { %466 = vmatpush.msk.msrb.mxu0 %vm323_vm3, %v279_v39 }
 0x2bb   :  { %467 = vmatmul.msk.f32.vlgmr.msrb.gmra.mxu0 %vm316_vm4, %v282_v38 }
 0x2c3   :  { %468 = vmatmul.msk.f32.gmra.mxu0 %vm316_vm4, %v283_v40 }
 0x338   :  { %v344_v49 = vpop.f32.mrf.mxu0 }
 0x339   :  { %v345_v50 = vadd.f32 %v344_v49, %v310_v47 }
 0x33b   :  { %v354_v51 = vadd.f32 %v483_v48, %v345_v50 }
 0x33d   :  { %v356_v52 = vmax.f32 %v354_v51, 0.0 }
 0x33f   :  { %469 = vmatmul.msk.f32.vlgmr.msra.gmra.mxu2 %vm167_vm1, %v356_v52 }
 0x340   :  { %v347_v54 = vpop.f32.mrf.mxu0 }
 0x341   :  { %v348_v55 = vadd.f32 %v347_v54, %v313_v53 }
 0x343   :  { %v355_v56 = vadd.f32 %v483_v48, %v348_v55 }
 0x345   :  { %v357_v57 = vmax.f32 %v355_v56, 0.0 }
 0x347   :  { %470 = vmatmul.msk.f32.gmra.mxu2 %vm167_vm1, %v357_v57 }
 0x3c2   :  { %v389_v60 = vpop.f32.mrf.mxu2 }
 0x3c3   :  { %v390_v61 = vadd.f32 %v484_v59, %v389_v60 }
 0x3c5   :  { %v395_v62 = vmax.f32 %v390_v61, 0.0 }
 0x3c7   :  { %471 = vmatmul.msk.f32.vlgmr.msrb.gmra.mxu1 %vm167_vm1, %v395_v62 }
 0x3ca   :  { %v392_v63 = vpop.f32.mrf.mxu2 }
 0x3cb   :  { %v393_v0 = vadd.f32 %v484_v59, %v392_v63 }
 0x3cd   :  { %v396_v1 = vmax.f32 %v393_v0, 0.0 }
 0x3cf   :  { %472 = vmatmul.msk.f32.gmra.mxu1 %vm167_vm1, %v396_v1 }
 0x444   :  { %v428_v3 = vpop.f32.mrf.mxu1 }
 0x445   :  { %v429_v4 = vadd.f32 %v485_v2, %v428_v3 }
 0x447   :  { %434 = vst [vmem:[#allocation10] sm:$0xff] %v429_v4 }
 0x44c   :  { %v431_v5 = vpop.f32.mrf.mxu1 }
 0x44d   :  { %v432_v6 = vadd.f32 %v485_v2, %v431_v5 }
 0x44f   :  { %435 = vst [vmem:[#allocation10 + $0x8] sm:$0xff] %v432_v6 }
 0x450   :  { %448 = dma.vmem_to_hbm [thread:$0]  %s441_s27, 256, %s443_s6, [#allocation4], %s615_s18, %s615_s18, %s616_s19  }
 0x451   :  { %612 = dma.done.wait [#allocation4], 256  }
 0x452   :  { %613 = vsyncadd [#allocation4], 4294967040 }
 0x453   :  { %453 = vsyncpa [#allocation3], 1 }
 0x454   :  { %454 = vsyncpa [#allocation6], 1 }
 0x455   :  { %455 = vsyncpa [#allocation9], 1 }
 0x456   :  { %456 = vsyncpa [#allocation4], 1 }

</bundles_post_ra>
